<compile_context>
chip_gen: v6e
topology: v6e:2x2x1
jax: 0.10.0
libtpu: 0.0.40
codegen_flags: <defaults>
</compile_context>

<pallas_src>
import functools

import jax
import jax.numpy as jnp
from jax import lax
from jax.experimental import pallas as pl
from jax.experimental.pallas import tpu as pltpu

# ---- Module hyperparameters (match the PyTorch __init__ defaults) ----
H_CH = 256          # input_ch
W_HID = 256         # W
HALF = W_HID // 2   # 128
OUT_CH = 3          # output_ch
OUT_PAD_ROWS = 8    # sublane-padded output rows for the transposed layer 3


def rgbnet_kernel(x_ref, w0_ref, b0_ref, w1_ref, b1_ref, w2t_ref, b2t_ref,
                  ot_ref):
    # x_ref: (tile_n, H_CH) f32 tile; cast to bf16 in-kernel (hidden under MXU).
    x = x_ref[...].astype(jnp.bfloat16)

    # feature = feature_linears(input_h)   (bf16 matmul, f32 accumulate)
    f = jnp.dot(x, w0_ref[...], preferred_element_type=jnp.float32) + b0_ref[...]

    # views_linears[0] + ReLU
    h = jnp.dot(f.astype(jnp.bfloat16), w1_ref[...],
                preferred_element_type=jnp.float32) + b1_ref[...]
    h = jnp.maximum(h, 0.0).astype(jnp.bfloat16)

    # views_linears[2], transposed: (8, 128) x (tile_n, 128)^T -> (8, tile_n).
    # Output stays lane-dense along the sample axis -> cheap full-lane stores.
    ot = lax.dot_general(w2t_ref[...], h,
                         dimension_numbers=(((1,), (1,)), ((), ())),
                         preferred_element_type=jnp.float32)
    ot_ref[...] = ot + b2t_ref[...]


@functools.partial(jax.jit, static_argnames=("tile_n",))
def rgbnet_forward(input_h, input_views, params, tile_n=2048):
    """Pallas forward. input_views is unused by the reference forward pass."""
    del input_views
    w0, b0, w1, b1, w2, b2 = params

    input_h = input_h.astype(jnp.float32)
    n = input_h.shape[0]

    # Clamp the tile to the 256-rounded batch; keep it a multiple of 256 so the
    # MXU M-dim stays dense on all generations. No explicit row padding: the
    # boundary block is masked by Pallas (rows are independent).
    tile_n_eff = min(tile_n, -(-n // 256) * 256)
    grid = (pl.cdiv(n, tile_n_eff),)

    # Small resident weights as bf16 (MXU-native); biases stay in f32.
    w0b = w0.astype(jnp.bfloat16)
    w1b = w1.astype(jnp.bfloat16)
    b0f = b0.astype(jnp.float32).reshape(1, W_HID)
    b1f = b1.astype(jnp.float32).reshape(1, HALF)

    # Transposed, sublane-padded (3 -> 8) final projection.
    w2t = jnp.zeros((OUT_PAD_ROWS, HALF), jnp.bfloat16).at[:OUT_CH, :].set(
        w2.astype(jnp.bfloat16).T)
    b2t = jnp.zeros((OUT_PAD_ROWS, 1), jnp.float32).at[:OUT_CH, :].set(
        b2.astype(jnp.float32).reshape(OUT_CH, 1))

    full = lambda i: (0, 0)  # weights/biases: same (resident) block every step

    out_t = pl.pallas_call(
        rgbnet_kernel,
        out_shape=jax.ShapeDtypeStruct((OUT_PAD_ROWS, n), jnp.float32),
        grid_spec=pltpu.PrefetchScalarGridSpec(
            num_scalar_prefetch=0,
            grid=grid,
            in_specs=[
                pl.BlockSpec((tile_n_eff, H_CH), lambda i: (i, 0)),  # input_h f32
                pl.BlockSpec((H_CH, W_HID), full),        # w0 (bf16)
                pl.BlockSpec((1, W_HID), full),           # b0 (f32)
                pl.BlockSpec((W_HID, HALF), full),        # w1 (bf16)
                pl.BlockSpec((1, HALF), full),            # b1 (f32)
                pl.BlockSpec((OUT_PAD_ROWS, HALF), full), # w2^T padded (bf16)
                pl.BlockSpec((OUT_PAD_ROWS, 1), full),    # b2^T padded (f32)
            ],
            out_specs=pl.BlockSpec((OUT_PAD_ROWS, tile_n_eff), lambda i: (0, i)),
        ),
        compiler_params=pltpu.CompilerParams(
            dimension_semantics=("parallel",)),
    )(input_h, w0b, b0f, w1b, b1f, w2t, b2t)

    # (8, n) -> (n, 3); always f32, matching the PyTorch reference output dtype.
    return out_t[:OUT_CH, :].T


def init_params(key, dtype=jnp.float32):
    """Deterministic synthetic parameters (PyTorch-style uniform fan-in init)."""
    ks = jax.random.split(key, 6)

    def lin(kw, kb, fan_in, fan_out):
        bound = 1.0 / (fan_in ** 0.5)
        w = jax.random.uniform(kw, (fan_in, fan_out), dtype, -bound, bound)
        b = jax.random.uniform(kb, (1, fan_out), dtype, -bound, bound)
        return w, b

    w0, b0 = lin(ks[0], ks[1], H_CH, W_HID)    # feature_linears
    w1, b1 = lin(ks[2], ks[3], W_HID, HALF)    # views_linears[0]
    w2, b2 = lin(ks[4], ks[5], HALF, OUT_CH)   # views_linears[2]
    return (w0, b0, w1, b1, w2, b2)


def rgbnet_reference(input_h, params):
    """Pure f32 reference (matches the PyTorch forward)."""
    w0, b0, w1, b1, w2, b2 = params
    f = input_h @ w0 + b0
    h = jnp.maximum(f @ w1 + b1, 0.0)
    return h @ w2 + b2


if __name__ == "__main__":
    key = jax.random.PRNGKey(0)
    k_param, k_h, k_v = jax.random.split(key, 3)

    params = init_params(k_param)

    N = 100  # small, non-multiple-of-tile batch (exercises boundary masking)
    input_h = jax.random.normal(k_h, (N, H_CH), jnp.float32)
    input_views = jax.random.normal(k_v, (N, 33), jnp.float32)  # views_ch=33 (unused)

    out = rgbnet_forward(input_h, input_views, params)
    out = jax.block_until_ready(out)

    ref = rgbnet_reference(input_h, params)
    assert out.shape == (N, OUT_CH), out.shape
    assert out.dtype == jnp.float32, out.dtype
    # bf16 matmul operands with f32 accumulation -> loose tolerance vs f32 ref.
    assert jnp.allclose(out, ref, atol=5e-2, rtol=5e-2), float(
        jnp.max(jnp.abs(out - ref)))

    print("KERNEL_OK")
</pallas_src>

<mosaic_0001>
module attributes {stable_mosaic.version = 11 : i64} {
  func.func @rgbnet_kernel(%arg0: i32, %arg1: memref<256x256xf32, #tpu.memory_space<vmem>>, %arg2: memref<256x256xbf16, #tpu.memory_space<vmem>>, %arg3: memref<1x256xf32, #tpu.memory_space<vmem>>, %arg4: memref<256x128xbf16, #tpu.memory_space<vmem>>, %arg5: memref<1x128xf32, #tpu.memory_space<vmem>>, %arg6: memref<8x128xbf16, #tpu.memory_space<vmem>>, %arg7: memref<8x1xf32, #tpu.memory_space<vmem>>, %arg8: memref<8x256xf32, #tpu.memory_space<vmem>>) attributes {dimension_semantics = [#tpu.dimension_semantics<parallel>], iteration_bounds = array<i64: 1>, scalar_prefetch = 0 : i64, scratch_operands = 0 : i64, tpu.core_type = #tpu.core_type<tc>, window_params = [{transform_indices = @transform_0, window_bounds = array<i64: 256, 256>}, {pipeline_mode = #tpu.pipeline_mode<synchronous>, transform_indices = @transform_1, window_bounds = array<i64: 256, 256>}, {pipeline_mode = #tpu.pipeline_mode<synchronous>, transform_indices = @transform_2, window_bounds = array<i64: 1, 256>}, {pipeline_mode = #tpu.pipeline_mode<synchronous>, transform_indices = @transform_3, window_bounds = array<i64: 256, 128>}, {pipeline_mode = #tpu.pipeline_mode<synchronous>, transform_indices = @transform_4, window_bounds = array<i64: 1, 128>}, {pipeline_mode = #tpu.pipeline_mode<synchronous>, transform_indices = @transform_5, window_bounds = array<i64: 8, 128>}, {pipeline_mode = #tpu.pipeline_mode<synchronous>, transform_indices = @transform_6, window_bounds = array<i64: 8, 1>}, {transform_indices = @transform_7, window_bounds = array<i64: 8, 256>}]} {
    %c0 = arith.constant 0 : index
    %c0_0 = arith.constant 0 : index
    %0 = vector.load %arg1[%c0, %c0_0] : memref<256x256xf32, #tpu.memory_space<vmem>>, vector<256x256xf32>
    %1 = arith.truncf %0 : vector<256x256xf32> to vector<256x256xbf16>
    %c0_1 = arith.constant 0 : index
    %c0_2 = arith.constant 0 : index
    %2 = vector.load %arg2[%c0_1, %c0_2] : memref<256x256xbf16, #tpu.memory_space<vmem>>, vector<256x256xbf16>
    %cst = arith.constant dense<0.000000e+00> : vector<256x256xf32>
    %3 = tpu.matmul %1, %2, %cst {dimension_numbers = #tpu.dot_dimension_numbers<[1], [0], [0], [1], [0, 0, 1, 1], [], []>} : vector<256x256xbf16>, vector<256x256xbf16>, vector<256x256xf32> -> vector<256x256xf32>
    %c0_3 = arith.constant 0 : index
    %c0_4 = arith.constant 0 : index
    %4 = vector.load %arg3[%c0_3, %c0_4] : memref<1x256xf32, #tpu.memory_space<vmem>>, vector<1x256xf32>
    %5 = vector.broadcast %4 : vector<1x256xf32> to vector<256x256xf32>
    %6 = arith.addf %3, %5 : vector<256x256xf32>
    %7 = arith.truncf %6 : vector<256x256xf32> to vector<256x256xbf16>
    %c0_5 = arith.constant 0 : index
    %c0_6 = arith.constant 0 : index
    %8 = vector.load %arg4[%c0_5, %c0_6] : memref<256x128xbf16, #tpu.memory_space<vmem>>, vector<256x128xbf16>
    %cst_7 = arith.constant dense<0.000000e+00> : vector<256x128xf32>
    %9 = tpu.matmul %7, %8, %cst_7 {dimension_numbers = #tpu.dot_dimension_numbers<[1], [0], [0], [1], [0, 0, 1, 1], [], []>} : vector<256x256xbf16>, vector<256x128xbf16>, vector<256x128xf32> -> vector<256x128xf32>
    %c0_8 = arith.constant 0 : index
    %c0_9 = arith.constant 0 : index
    %10 = vector.load %arg5[%c0_8, %c0_9] : memref<1x128xf32, #tpu.memory_space<vmem>>, vector<1x128xf32>
    %11 = vector.broadcast %10 : vector<1x128xf32> to vector<256x128xf32>
    %12 = arith.addf %9, %11 : vector<256x128xf32>
    %cst_10 = arith.constant 0.000000e+00 : f32
    %13 = vector.broadcast %cst_10 : f32 to vector<256x128xf32>
    %14 = arith.maximumf %12, %13 : vector<256x128xf32>
    %15 = arith.truncf %14 : vector<256x128xf32> to vector<256x128xbf16>
    %c0_11 = arith.constant 0 : index
    %c0_12 = arith.constant 0 : index
    %16 = vector.load %arg6[%c0_11, %c0_12] : memref<8x128xbf16, #tpu.memory_space<vmem>>, vector<8x128xbf16>
    %cst_13 = arith.constant dense<0.000000e+00> : vector<8x256xf32>
    %17 = tpu.matmul %16, %15, %cst_13 {dimension_numbers = #tpu.dot_dimension_numbers<[1], [1], [0], [0], [0, 0, 1, 0], [], []>} : vector<8x128xbf16>, vector<256x128xbf16>, vector<8x256xf32> -> vector<8x256xf32>
    %c0_14 = arith.constant 0 : index
    %c0_15 = arith.constant 0 : index
    %18 = vector.load %arg7[%c0_14, %c0_15] : memref<8x1xf32, #tpu.memory_space<vmem>>, vector<8x1xf32>
    %19 = vector.broadcast %18 : vector<8x1xf32> to vector<8x256xf32>
    %20 = arith.addf %17, %19 : vector<8x256xf32>
    %c0_16 = arith.constant 0 : index
    %c0_17 = arith.constant 0 : index
    %21 = vector.load %arg8[%c0_16, %c0_17] : memref<8x256xf32, #tpu.memory_space<vmem>>, vector<8x256xf32>
    tpu.vector_store %arg8[%c0_16, %c0_17], %20 {strides = array<i32>} : memref<8x256xf32, #tpu.memory_space<vmem>>, vector<8x256xf32>,
    return
  }
  func.func @transform_0(%arg0: i32) -> (i32, i32) {
    %c0_i32 = arith.constant 0 : i32
    %c0_i32_0 = arith.constant 0 : i32
    return %arg0, %c0_i32 : i32, i32
  }
  func.func @transform_1(%arg0: i32) -> (i32, i32) {
    %c0_i32 = arith.constant 0 : i32
    %c0_i32_0 = arith.constant 0 : i32
    %c0_i32_1 = arith.constant 0 : i32
    return %c0_i32, %c0_i32_0 : i32, i32
  }
  func.func @transform_2(%arg0: i32) -> (i32, i32) {
    %c0_i32 = arith.constant 0 : i32
    %c0_i32_0 = arith.constant 0 : i32
    %c0_i32_1 = arith.constant 0 : i32
    return %c0_i32, %c0_i32_0 : i32, i32
  }
  func.func @transform_3(%arg0: i32) -> (i32, i32) {
    %c0_i32 = arith.constant 0 : i32
    %c0_i32_0 = arith.constant 0 : i32
    %c0_i32_1 = arith.constant 0 : i32
    return %c0_i32, %c0_i32_0 : i32, i32
  }
  func.func @transform_4(%arg0: i32) -> (i32, i32) {
    %c0_i32 = arith.constant 0 : i32
    %c0_i32_0 = arith.constant 0 : i32
    %c0_i32_1 = arith.constant 0 : i32
    return %c0_i32, %c0_i32_0 : i32, i32
  }
  func.func @transform_5(%arg0: i32) -> (i32, i32) {
    %c0_i32 = arith.constant 0 : i32
    %c0_i32_0 = arith.constant 0 : i32
    %c0_i32_1 = arith.constant 0 : i32
    return %c0_i32, %c0_i32_0 : i32, i32
  }
  func.func @transform_6(%arg0: i32) -> (i32, i32) {
    %c0_i32 = arith.constant 0 : i32
    %c0_i32_0 = arith.constant 0 : i32
    %c0_i32_1 = arith.constant 0 : i32
    return %c0_i32, %c0_i32_0 : i32, i32
  }
  func.func @transform_7(%arg0: i32) -> (i32, i32) {
    %c0_i32 = arith.constant 0 : i32
    %c0_i32_0 = arith.constant 0 : i32
    return %c0_i32, %arg0 : i32, i32
  }
}

</mosaic_0001>

<bundles_post_ra>
// kernel: rgbnet_forward.1
= control target key start
LH: loop header
LB: loop body
LE: loop exit
PB: predicated region body
PF: predicated region fallthrough
CT: control target
= control target key end

     0   :  { %s1760_s0 = inlined_call_operand.vmem [shape: f32[100,256], index: 0, kind: input, shape index: {}]   ;;  %s1761_s1 = inlined_call_operand.vmem [shape: bf16[256,256], index: 1, kind: input, shape index: {}]   ;;  %s1762_s2 = inlined_call_operand.vmem [shape: f32[1,256], index: 2, kind: input, shape index: {}]   ;;  %s1763_s3 = inlined_call_operand.vmem [shape: bf16[256,128], index: 3, kind: input, shape index: {}]   ;;  %s1764_s4 = inlined_call_operand.vmem [shape: f32[1,128], index: 4, kind: input, shape index: {}]   ;;  %s1765_s5 = inlined_call_operand.vmem [shape: bf16[8,128], index: 5, kind: input, shape index: {}]   ;;  %s1766_s6 = inlined_call_operand.vmem [shape: f32[8,1], index: 6, kind: input, shape index: {}]   ;;  %s1767_s7 = inlined_call_operand.vmem [shape: f32[8,100], index: 7, kind: output, shape index: {}]  }
   0x1   :  { %v1168_v0 = vld [vmem:[%s1761_s1 + $0x74] ss:$8 sps:$4 sm:$0xff]   ;;  %v1170_v1 = vld [vmem:[%s1761_s1 + $0x70] ss:$8 sps:$4 sm:$0xff]   ;;  %v1171_v2 = vld [vmem:[%s1761_s1 + $0x64] ss:$8 sps:$4 sm:$0xff]  }
   0x2   :  { %327 = vmatprep.subr.bf16.mxu0 %v1168_v0  ;;  %v1173_v3 = vld [vmem:[%s1761_s1 + $0x60] ss:$8 sps:$4 sm:$0xff]   ;;  %v1174_v4 = vld [vmem:[%s1761_s1 + $0x54] ss:$8 sps:$4 sm:$0xff]   ;;  %v1176_v5 = vld [vmem:[%s1761_s1 + $0x50] ss:$8 sps:$4 sm:$0xff]  }
   0x3   :  { %328 = vmatpush1.bf16.msra.mxu0 %v1170_v1  ;;  %v1177_v6 = vld [vmem:[%s1761_s1 + $0x44] ss:$8 sps:$4 sm:$0xff]   ;;  %v1179_v7 = vld [vmem:[%s1761_s1 + $0x40] ss:$8 sps:$4 sm:$0xff]   ;;  %v1180_v8 = vld [vmem:[%s1761_s1 + $0x34] ss:$8 sps:$4 sm:$0xff]  }
   0x4   :  { %329 = vmatprep.subr.bf16.mxu0 %v1171_v2  ;;  %v1182_v9 = vld [vmem:[%s1761_s1 + $0x30] ss:$8 sps:$4 sm:$0xff]   ;;  %v1183_v10 = vld [vmem:[%s1761_s1 + $0x24] ss:$8 sps:$4 sm:$0xff]   ;;  %v1185_v11 = vld [vmem:[%s1761_s1 + $0x20] ss:$8 sps:$4 sm:$0xff]  }
   0x5   :  { %v1186_v12 = vld [vmem:[%s1761_s1 + $0x14] ss:$8 sps:$4 sm:$0xff]   ;;  %v28_v13 = vld [vmem:[%s1760_s0 + $0x8] sm:$0xff]  ;;  %v1188_v16 = vld [vmem:[%s1761_s1 + $0x10] ss:$8 sps:$4 sm:$0xff]  }
   0x6   :  { %v30_v14 = vld [vmem:[%s1760_s0 + $0x18] sm:$0xff]  ;;  %v1189_v17 = vld [vmem:[%s1761_s1 + $0x4] ss:$8 sps:$4 sm:$0xff]   ;;  %v1191_v18 = vld [vmem:[%s1761_s1] ss:$8 sps:$4 sm:$0xff]  }
   0x7   :  { %330 = vmatpush1.bf16.msra.mxu0 %v1173_v3  ;;  %v92_v15 = vpack.c.bf16 %v30_v14, %v28_v13  ;;  %v1192_v19 = vld [vmem:[%s1761_s1 + $0xf4] ss:$8 sps:$4 sm:$0xff]   ;;  %v1194_v20 = vld [vmem:[%s1761_s1 + $0xf0] ss:$8 sps:$4 sm:$0xff]   ;;  %v1195_v21 = vld [vmem:[%s1761_s1 + $0xe4] ss:$8 sps:$4 sm:$0xff]  }
   0x8   :  { %331 = vmatprep.subr.bf16.mxu0 %v1174_v4  ;;  %v1197_v22 = vld [vmem:[%s1761_s1 + $0xe0] ss:$8 sps:$4 sm:$0xff]   ;;  %v1198_v23 = vld [vmem:[%s1761_s1 + $0xd4] ss:$8 sps:$4 sm:$0xff]   ;;  %v1200_v24 = vld [vmem:[%s1761_s1 + $0xd0] ss:$8 sps:$4 sm:$0xff]  }
   0x9   :  { %359 = vmatprep.mubr.bf16.mxu0 %v92_v15  ;;  %v1201_v25 = vld [vmem:[%s1761_s1 + $0xc4] ss:$8 sps:$4 sm:$0xff]   ;;  %v1203_v26 = vld [vmem:[%s1761_s1 + $0xc0] ss:$8 sps:$4 sm:$0xff]   ;;  %v1204_v27 = vld [vmem:[%s1761_s1 + $0xb4] ss:$8 sps:$4 sm:$0xff]  }
   0xa   :  { %v1206_v28 = vld [vmem:[%s1761_s1 + $0xb0] ss:$8 sps:$4 sm:$0xff]   ;;  %v1207_v29 = vld [vmem:[%s1761_s1 + $0xa4] ss:$8 sps:$4 sm:$0xff]   ;;  %v1209_v30 = vld [vmem:[%s1761_s1 + $0xa0] ss:$8 sps:$4 sm:$0xff]  }
   0xb   :  { %332 = vmatpush1.bf16.msra.mxu0 %v1176_v5  ;;  %v1210_v31 = vld [vmem:[%s1761_s1 + $0x94] ss:$8 sps:$4 sm:$0xff]   ;;  %v1212_v32 = vld [vmem:[%s1761_s1 + $0x90] ss:$8 sps:$4 sm:$0xff]   ;;  %v1213_v33 = vld [vmem:[%s1761_s1 + $0x84] ss:$8 sps:$4 sm:$0xff]  }
   0xc   :  { %333 = vmatprep.subr.bf16.mxu0 %v1177_v6  ;;  %v1216_v34 = vld [vmem:[%s1763_s3 + $0x78] sm:$0xff]   ;;  %v1218_v36 = vld [vmem:[%s1763_s3 + $0x70] sm:$0xff]   ;;  %v1215_v37 = vld [vmem:[%s1761_s1 + $0x80] ss:$8 sps:$4 sm:$0xff]  }
   0xd   :  { %v1217_v35 = vld [vmem:[%s1763_s3 + $0x38] sm:$0xff]   ;;  %v27_v38 = vld [vmem:[%s1760_s0] sm:$0xff]  ;;  %v29_v39 = vld [vmem:[%s1760_s0 + $0x10] sm:$0xff]  ;;  %1036 = vmatprep.subr.bf16.mxu1 %v1216_v34 }
   0xe   :  { %v32_v40 = vld [vmem:[%s1760_s0 + $0x28] sm:$0xff]  ;;  %v34_v41 = vld [vmem:[%s1760_s0 + $0x38] sm:$0xff]  ;;  %1037 = vmatpush3.bf16.msra.mxu1 %v1217_v35  ;;  %v1219_v42 = vld [vmem:[%s1763_s3 + $0x30] sm:$0xff]   ;;  %v91_v43 = vpack.c.bf16 %v29_v39, %v27_v38 }
   0xf   :  { %334 = vmatpush1.bf16.msra.mxu0 %v1179_v7  ;;  %1038 = vmatprep.subr.bf16.mxu1 %v1218_v36  ;;  %v1220_v44 = vld [vmem:[%s1763_s3 + $0x68] sm:$0xff]   ;;  %v94_v45 = vpack.c.bf16 %v34_v41, %v32_v40  ;;  %v1222_v47 = vld [vmem:[%s1763_s3 + $0x60] sm:$0xff]   ;;  %v33_v49 = vld [vmem:[%s1760_s0 + $0x30] sm:$0xff] }
  0x10   :  { %335 = vmatprep.subr.bf16.mxu0 %v1180_v8  ;;  %v1221_v46 = vld [vmem:[%s1763_s3 + $0x28] sm:$0xff]   ;;  %v31_v48 = vld [vmem:[%s1760_s0 + $0x20] sm:$0xff]  ;;  %v38_v51 = vld [vmem:[%s1760_s0 + $0x58] sm:$0xff] }
  0x11   :  { %v36_v50 = vld [vmem:[%s1760_s0 + $0x48] sm:$0xff]  ;;  %v1223_v52 = vld [vmem:[%s1763_s3 + $0x20] sm:$0xff]   ;;  %v93_v53 = vpack.c.bf16 %v33_v49, %v31_v48  ;;  %v1224_v54 = vld [vmem:[%s1763_s3 + $0x58] sm:$0xff]  }
  0x12   :  { %1039 = vmatpush3.bf16.msra.mxu1 %v1219_v42  ;;  %v96_v55 = vpack.c.bf16 %v38_v51, %v36_v50  ;;  %v1225_v56 = vld [vmem:[%s1763_s3 + $0x18] sm:$0xff]   ;;  %v35_v57 = vld [vmem:[%s1760_s0 + $0x40] sm:$0xff]  ;;  %v37_v58 = vld [vmem:[%s1760_s0 + $0x50] sm:$0xff] }
  0x13   :  { %336 = vmatpush1.bf16.msra.mxu0 %v1182_v9  ;;  %1040 = vmatprep.subr.bf16.mxu1 %v1220_v44  ;;  %v40_v59 = vld [vmem:[%s1760_s0 + $0x68] sm:$0xff]  ;;  %v42_v60 = vld [vmem:[%s1760_s0 + $0x78] sm:$0xff]  ;;  %v95_v61 = vpack.c.bf16 %v37_v58, %v35_v57  ;;  %v39_v63 = vld [vmem:[%s1760_s0 + $0x60] sm:$0xff] }
  0x14   :  { %337 = vmatprep.subr.bf16.mxu0 %v1183_v10  ;;  %v98_v62 = vpack.c.bf16 %v42_v60, %v40_v59  ;;  %v41_v0 = vld [vmem:[%s1760_s0 + $0x70] sm:$0xff]  ;;  %v44_v1 = vld [vmem:[%s1760_s0 + $0x88] sm:$0xff]  ;;  %v46_v2 = vld [vmem:[%s1760_s0 + $0x98] sm:$0xff] }
  0x15   :  { %v97_v3 = vpack.c.bf16 %v41_v0, %v39_v63  ;;  %v100_v4 = vpack.c.bf16 %v46_v2, %v44_v1  ;;  %v43_v5 = vld [vmem:[%s1760_s0 + $0x80] sm:$0xff]  ;;  %v45_v6 = vld [vmem:[%s1760_s0 + $0x90] sm:$0xff]  ;;  %v48_v7 = vld [vmem:[%s1760_s0 + $0xa8] sm:$0xff] }
  0x16   :  { %1041 = vmatpush3.bf16.msra.mxu1 %v1221_v46  ;;  %v50_v8 = vld [vmem:[%s1760_s0 + $0xb8] sm:$0xff]  ;;  %v99_v9 = vpack.c.bf16 %v45_v6, %v43_v5  ;;  %v52_v13 = vld [vmem:[%s1760_s0 + $0xc8] sm:$0xff]  ;;  %v1226_v35 = vld [vmem:[%s1763_s3 + $0x50] sm:$0xff]  }
  0x17   :  { %338 = vmatpush1.bf16.msra.mxu0 %v1185_v11  ;;  %1042 = vmatprep.subr.bf16.mxu1 %v1222_v47  ;;  %v102_v10 = vpack.c.bf16 %v50_v8, %v48_v7  ;;  %v47_v11 = vld [vmem:[%s1760_s0 + $0xa0] sm:$0xff]  ;;  %v54_v14 = vld [vmem:[%s1760_s0 + $0xd8] sm:$0xff]  ;;  %v1227_v36 = vld [vmem:[%s1763_s3 + $0x10] sm:$0xff]  }
  0x18   :  { %339 = vmatprep.subr.bf16.mxu0 %v1186_v12  ;;  %v49_v12 = vld [vmem:[%s1760_s0 + $0xb0] sm:$0xff]  ;;  %v68_v39 = vld [vmem:[%s1760_s0 + $0x148] sm:$0xff]  ;;  %v70_v40 = vld [vmem:[%s1760_s0 + $0x158] sm:$0xff] }
  0x19   :  { %v101_v15 = vpack.c.bf16 %v49_v12, %v47_v11  ;;  %v65_v38 = vld [vmem:[%s1760_s0 + $0x130] sm:$0xff]  ;;  %v1228_v41 = vld [vmem:[%s1763_s3 + $0x48] sm:$0xff]   ;;  %v112_v44 = vpack.c.bf16 %v70_v40, %v68_v39  ;;  %v1231_v46 = vld [vmem:[%s1763_s3] sm:$0xff]  }
  0x1a   :  { %1043 = vmatpush3.bf16.msra.mxu1 %v1223_v52  ;;  %v1229_v42 = vld [vmem:[%s1763_s3 + $0x8] sm:$0xff]   ;;  %v67_v47 = vld [vmem:[%s1760_s0 + $0x140] sm:$0xff]  ;;  %v69_v48 = vld [vmem:[%s1760_s0 + $0x150] sm:$0xff] }
  0x1b   :  { %340 = vmatpush1.bf16.msra.mxu0 %v1188_v16  ;;  %1044 = vmatprep.subr.bf16.mxu1 %v1224_v54  ;;  %v104_v16 = vpack.c.bf16 %v54_v14, %v52_v13  ;;  %v72_v49 = vld [vmem:[%s1760_s0 + $0x168] sm:$0xff]  ;;  %v74_v50 = vld [vmem:[%s1760_s0 + $0x178] sm:$0xff]  ;;  %v111_v51 = vpack.c.bf16 %v69_v48, %v67_v47  ;;  %v73_v54 = vld [vmem:[%s1760_s0 + $0x170] sm:$0xff] }
  0x1c   :  { %341 = vmatprep.subr.bf16.mxu0 %v1189_v17  ;;  %v51_v17 = vld [vmem:[%s1760_s0 + $0xc0] sm:$0xff]  ;;  %v114_v52 = vpack.c.bf16 %v74_v50, %v72_v49  ;;  %v77_v60 = vld [vmem:[%s1760_s0 + $0x190] sm:$0xff] }
  0x1d   :  { %v75_v59 = vld [vmem:[%s1760_s0 + $0x180] sm:$0xff]  ;;  %v81_v2 = vld [vmem:[%s1760_s0 + $0x1b0] sm:$0xff] }
  0x1e   :  { %1045 = vmatpush3.bf16.msra.mxu1 %v1225_v56  ;;  %v78_v56 = vld [vmem:[%s1760_s0 + $0x198] sm:$0xff]  ;;  %v115_v63 = vpack.c.bf16 %v77_v60, %v75_v59  ;;  %v79_v1 = vld [vmem:[%s1760_s0 + $0x1a0] sm:$0xff]  ;;  %v85_v8 = vld [vmem:[%s1760_s0 + $0x1d0] sm:$0xff] }
  0x1f   :  { %342 = vmatpush1.bf16.msra.mxu0 %v1191_v18  ;;  %v53_v18 = vld [vmem:[%s1760_s0 + $0xd0] sm:$0xff]  ;;  %1046 = vmatprep.subr.bf16.mxu1 %v1226_v35  ;;  %v117_v5 = vpack.c.bf16 %v81_v2, %v79_v1  ;;  %v83_v7 = vld [vmem:[%s1760_s0 + $0x1c0] sm:$0xff] }
  0x20   :  { %343 = vmatprep.subr.bf16.mxu0 %v1192_v19  ;;  %v56_v19 = vld [vmem:[%s1760_s0 + $0xe8] sm:$0xff]  ;;  %v119_v11 = vpack.c.bf16 %v85_v8, %v83_v7  ;;  %v87_v13 = vld [vmem:[%s1760_s0 + $0x1e0] sm:$0xff]  ;;  %v89_v14 = vld [vmem:[%s1760_s0 + $0x1f0] sm:$0xff] }
  0x22   :  { %1047 = vmatpush3.bf16.msra.mxu1 %v1227_v36 }
  0x23   :  { %344 = vmatpush2.bf16.msra.mxu0 %v1194_v20  ;;  %v58_v20 = vld [vmem:[%s1760_s0 + $0xf8] sm:$0xff]  ;;  %1048 = vmatprep.subr.bf16.mxu1 %v1228_v41 }
  0x24   :  { %345 = vmatprep.subr.bf16.mxu0 %v1195_v21  ;;  %v103_v21 = vpack.c.bf16 %v53_v18, %v51_v17 }
  0x26   :  { %1049 = vmatpush3.bf16.msra.mxu1 %v1229_v42 }
  0x27   :  { %346 = vmatpush2.bf16.msra.mxu0 %v1197_v22  ;;  %v106_v22 = vpack.c.bf16 %v58_v20, %v56_v19 }
  0x28   :  { %347 = vmatprep.subr.bf16.mxu0 %v1198_v23  ;;  %v55_v23 = vld [vmem:[%s1760_s0 + $0xe0] sm:$0xff] }
  0x2b   :  { %348 = vmatpush2.bf16.msra.mxu0 %v1200_v24  ;;  %v57_v24 = vld [vmem:[%s1760_s0 + $0xf0] sm:$0xff] }
  0x2c   :  { %349 = vmatprep.subr.bf16.mxu0 %v1201_v25  ;;  %v60_v25 = vld [vmem:[%s1760_s0 + $0x108] sm:$0xff] }
  0x2f   :  { %350 = vmatpush2.bf16.msra.mxu0 %v1203_v26  ;;  %v62_v26 = vld [vmem:[%s1760_s0 + $0x118] sm:$0xff] }
  0x30   :  { %351 = vmatprep.subr.bf16.mxu0 %v1204_v27  ;;  %v105_v27 = vpack.c.bf16 %v57_v24, %v55_v23 }
  0x33   :  { %352 = vmatpush2.bf16.msra.mxu0 %v1206_v28  ;;  %v108_v28 = vpack.c.bf16 %v62_v26, %v60_v25 }
  0x34   :  { %353 = vmatprep.subr.bf16.mxu0 %v1207_v29  ;;  %v59_v29 = vld [vmem:[%s1760_s0 + $0x100] sm:$0xff] }
  0x37   :  { %354 = vmatpush2.bf16.msra.mxu0 %v1209_v30  ;;  %v61_v30 = vld [vmem:[%s1760_s0 + $0x110] sm:$0xff] }
  0x38   :  { %355 = vmatprep.subr.bf16.mxu0 %v1210_v31  ;;  %v64_v31 = vld [vmem:[%s1760_s0 + $0x128] sm:$0xff] }
  0x3b   :  { %356 = vmatpush2.bf16.msra.mxu0 %v1212_v32  ;;  %v66_v32 = vld [vmem:[%s1760_s0 + $0x138] sm:$0xff] }
  0x3c   :  { %357 = vmatprep.subr.bf16.mxu0 %v1213_v33  ;;  %v107_v33 = vpack.c.bf16 %v61_v30, %v59_v29  ;;  %v110_v34 = vpack.c.bf16 %v66_v32, %v64_v31 }
  0x3f   :  { %358 = vmatpush2.bf16.msra.mxu0 %v1215_v37  ;;  %v63_v37 = vld [vmem:[%s1760_s0 + $0x120] sm:$0xff] }
  0x42   :  { %360 = vmatmul.mubr.bf16.vlgmr.msra.gmra.mxu0 %v91_v43  ;;  %v109_v43 = vpack.c.bf16 %v65_v38, %v63_v37 }
  0x43   :  { %369 = vmatprep.mubr.bf16.mxu0 %v94_v45  ;;  %v1230_v45 = vld [vmem:[%s1763_s3 + $0x40] sm:$0xff]  }
  0x44   :  { %1050 = vmatprep.subr.bf16.mxu1 %v1230_v45 }
  0x45   :  { %1051 = vmatpush3.bf16.msra.mxu1 %v1231_v46 }
  0x4a   :  { %370 = vmatmul.mubr.bf16.gmra.mxu0 %v93_v53  ;;  %v71_v53 = vld [vmem:[%s1760_s0 + $0x160] sm:$0xff] }
  0x4b   :  { %379 = vmatprep.mubr.bf16.mxu0 %v96_v55  ;;  %v76_v55 = vld [vmem:[%s1760_s0 + $0x188] sm:$0xff]  ;;  %v113_v57 = vpack.c.bf16 %v73_v54, %v71_v53 }
  0x4c   :  { %v116_v58 = vpack.c.bf16 %v78_v56, %v76_v55 }
  0x52   :  { %380 = vmatmul.mubr.bf16.gmra.mxu0 %v95_v61  ;;  %v80_v61 = vld [vmem:[%s1760_s0 + $0x1a8] sm:$0xff] }
  0x53   :  { %389 = vmatprep.mubr.bf16.mxu0 %v98_v62  ;;  %v82_v62 = vld [vmem:[%s1760_s0 + $0x1b8] sm:$0xff] }
  0x54   :  { %v118_v0 = vpack.c.bf16 %v82_v62, %v80_v61 }
  0x5a   :  { %390 = vmatmul.mubr.bf16.gmra.mxu0 %v97_v3  ;;  %v84_v3 = vld [vmem:[%s1760_s0 + $0x1c8] sm:$0xff] }
  0x5b   :  { %399 = vmatprep.mubr.bf16.mxu0 %v100_v4  ;;  %v86_v4 = vld [vmem:[%s1760_s0 + $0x1d8] sm:$0xff] }
  0x5c   :  { %v120_v6 = vpack.c.bf16 %v86_v4, %v84_v3 }
  0x62   :  { %400 = vmatmul.mubr.bf16.gmra.mxu0 %v99_v9  ;;  %v88_v9 = vld [vmem:[%s1760_s0 + $0x1e8] sm:$0xff] }
  0x63   :  { %409 = vmatprep.mubr.bf16.mxu0 %v102_v10  ;;  %v90_v10 = vld [vmem:[%s1760_s0 + $0x1f8] sm:$0xff] }
  0x64   :  { %v122_v12 = vpack.c.bf16 %v90_v10, %v88_v9 }
  0x6a   :  { %410 = vmatmul.mubr.bf16.gmra.mxu0 %v101_v15  ;;  %v121_v15 = vpack.c.bf16 %v89_v14, %v87_v13 }
  0x6b   :  { %419 = vmatprep.mubr.bf16.mxu0 %v104_v16  ;;  %v157_v16 = vlaneseq }
  0x6d   :  { %v158_v17 = vshrl.u32 %v157_v16, 7 }
  0x6f   :  { %v163_v18 = vsub.s32 1, %v158_v17  ;;  %v159_v19 = vsub.s32 0, %v158_v17 }
  0x72   :  { %420 = vmatmul.mubr.bf16.gmra.mxu0 %v103_v21  ;;  %v155_v21 = vld [vmem:[%s1762_s2] sm:$0x3] }
  0x73   :  { %429 = vmatprep.mubr.bf16.mxu0 %v106_v22  ;;  %v1612_v23 = vrot.slane %v155_v21, %v163_v18  ;;  %v1614_v24 = vrot.slane %v155_v21, %v159_v19 }
  0x7a   :  { %430 = vmatmul.mubr.bf16.gmra.mxu0 %v105_v27 }
  0x7b   :  { %439 = vmatprep.mubr.bf16.mxu0 %v108_v28 }
  0x82   :  { %440 = vmatmul.mubr.bf16.gmra.mxu0 %v107_v33 }
  0x83   :  { %449 = vmatprep.mubr.bf16.mxu0 %v110_v34 }
  0x8a   :  { %450 = vmatmul.mubr.bf16.gmra.mxu0 %v109_v43 }
  0x8b   :  { %459 = vmatprep.mubr.bf16.mxu0 %v112_v44 }
  0x92   :  { %460 = vmatmul.mubr.bf16.gmra.mxu0 %v111_v51 }
  0x93   :  { %469 = vmatprep.mubr.bf16.mxu0 %v114_v52 }
  0x9a   :  { %470 = vmatmul.mubr.bf16.gmra.mxu0 %v113_v57 }
  0x9b   :  { %479 = vmatprep.mubr.bf16.mxu0 %v116_v58 }
  0xa2   :  { %480 = vmatmul.mubr.bf16.gmra.mxu0 %v115_v63 }
  0xa3   :  { %489 = vmatprep.mubr.bf16.mxu0 %v118_v0 }
  0xaa   :  { %490 = vmatmul.mubr.bf16.gmra.mxu0 %v117_v5 }
  0xab   :  { %499 = vmatprep.mubr.bf16.mxu0 %v120_v6 }
  0xb2   :  { %500 = vmatmul.mubr.bf16.gmra.mxu0 %v119_v11 }
  0xb3   :  { %509 = vmatprep.mubr.bf16.mxu0 %v122_v12 }
  0xba   :  { %510 = vmatmul.mubr.bf16.gmra.mxu0 %v121_v15 }
 0x102   :  { %v361_v20 = vpop.f32.mrf.mxu0 }
 0x103   :  { %v362_v30 = vadd.f32 %v361_v20, %v1614_v24 }
 0x104   :  { %v363_v22 = vpop.f32.mrf.mxu0 }
 0x105   :  { %v364_v28 = vadd.f32 %v363_v22, %v1612_v23 }
 0x106   :  { %v365_v25 = vpop.f32.mrf.mxu0 }
 0x107   :  { %v366_v26 = vadd.f32 %v365_v25, %v1614_v24 }
 0x108   :  { %v367_v27 = vpop.f32.mrf.mxu0 }
 0x109   :  { %v368_v29 = vadd.f32 %v367_v27, %v1612_v23  ;;  %v520_v33 = vpack.c.bf16 %v366_v26, %v362_v30 }
 0x10a   :  { %v371_v31 = vpop.f32.mrf.mxu0 }
 0x10b   :  { %v521_v32 = vpack.c.bf16 %v368_v29, %v364_v28  ;;  %v372_v40 = vadd.f32 %v371_v31, %v1614_v24 }
 0x10c   :  { %v373_v34 = vpop.f32.mrf.mxu0 }
 0x10d   :  { %719 = vmatprep.mubr.bf16.mxu1 %v521_v32  ;;  %v374_v38 = vadd.f32 %v373_v34, %v1612_v23 }
 0x10e   :  { %v375_v35 = vpop.f32.mrf.mxu0  ;;  %720 = vmatmul.mubr.bf16.vlgmr.msra.gmra.mxu1 %v520_v33 }
 0x10f   :  { %v376_v36 = vadd.f32 %v375_v35, %v1614_v24 }
 0x110   :  { %v377_v37 = vpop.f32.mrf.mxu0 }
 0x111   :  { %v378_v39 = vadd.f32 %v377_v37, %v1612_v23  ;;  %v522_v43 = vpack.c.bf16 %v376_v36, %v372_v40 }
 0x112   :  { %v381_v41 = vpop.f32.mrf.mxu0 }
 0x113   :  { %v523_v42 = vpack.c.bf16 %v378_v39, %v374_v38  ;;  %v382_v50 = vadd.f32 %v381_v41, %v1614_v24 }
 0x114   :  { %v383_v44 = vpop.f32.mrf.mxu0 }
 0x115   :  { %727 = vmatprep.mubr.bf16.mxu1 %v523_v42  ;;  %v384_v48 = vadd.f32 %v383_v44, %v1612_v23 }
 0x116   :  { %v385_v45 = vpop.f32.mrf.mxu0  ;;  %728 = vmatmul.mubr.bf16.gmra.mxu1 %v522_v43 }
 0x117   :  { %v386_v46 = vadd.f32 %v385_v45, %v1614_v24 }
 0x118   :  { %v387_v47 = vpop.f32.mrf.mxu0 }
 0x119   :  { %v388_v49 = vadd.f32 %v387_v47, %v1612_v23  ;;  %v524_v53 = vpack.c.bf16 %v386_v46, %v382_v50 }
 0x11a   :  { %v391_v51 = vpop.f32.mrf.mxu0 }
 0x11b   :  { %v525_v52 = vpack.c.bf16 %v388_v49, %v384_v48  ;;  %v392_v60 = vadd.f32 %v391_v51, %v1614_v24 }
 0x11c   :  { %v393_v54 = vpop.f32.mrf.mxu0 }
 0x11d   :  { %735 = vmatprep.mubr.bf16.mxu1 %v525_v52  ;;  %v394_v58 = vadd.f32 %v393_v54, %v1612_v23 }
 0x11e   :  { %v395_v55 = vpop.f32.mrf.mxu0  ;;  %736 = vmatmul.mubr.bf16.gmra.mxu1 %v524_v53 }
 0x11f   :  { %v396_v56 = vadd.f32 %v395_v55, %v1614_v24 }
 0x120   :  { %v397_v57 = vpop.f32.mrf.mxu0 }
 0x121   :  { %v398_v59 = vadd.f32 %v397_v57, %v1612_v23  ;;  %v526_v63 = vpack.c.bf16 %v396_v56, %v392_v60 }
 0x122   :  { %v401_v61 = vpop.f32.mrf.mxu0 }
 0x123   :  { %v527_v62 = vpack.c.bf16 %v398_v59, %v394_v58  ;;  %v402_v6 = vadd.f32 %v401_v61, %v1614_v24 }
 0x124   :  { %v403_v0 = vpop.f32.mrf.mxu0 }
 0x125   :  { %743 = vmatprep.mubr.bf16.mxu1 %v527_v62  ;;  %v404_v4 = vadd.f32 %v403_v0, %v1612_v23 }
 0x126   :  { %v405_v1 = vpop.f32.mrf.mxu0  ;;  %744 = vmatmul.mubr.bf16.gmra.mxu1 %v526_v63 }
 0x127   :  { %v406_v2 = vadd.f32 %v405_v1, %v1614_v24 }
 0x128   :  { %v407_v3 = vpop.f32.mrf.mxu0 }
 0x129   :  { %v408_v5 = vadd.f32 %v407_v3, %v1612_v23  ;;  %v528_v9 = vpack.c.bf16 %v406_v2, %v402_v6 }
 0x12a   :  { %v411_v7 = vpop.f32.mrf.mxu0 }
 0x12b   :  { %v529_v8 = vpack.c.bf16 %v408_v5, %v404_v4  ;;  %v412_v16 = vadd.f32 %v411_v7, %v1614_v24 }
 0x12c   :  { %v413_v10 = vpop.f32.mrf.mxu0 }
 0x12d   :  { %751 = vmatprep.mubr.bf16.mxu1 %v529_v8  ;;  %v414_v14 = vadd.f32 %v413_v10, %v1612_v23 }
 0x12e   :  { %v415_v11 = vpop.f32.mrf.mxu0  ;;  %752 = vmatmul.mubr.bf16.gmra.mxu1 %v528_v9 }
 0x12f   :  { %v416_v12 = vadd.f32 %v415_v11, %v1614_v24 }
 0x130   :  { %v417_v13 = vpop.f32.mrf.mxu0 }
 0x131   :  { %v418_v15 = vadd.f32 %v417_v13, %v1612_v23  ;;  %v530_v19 = vpack.c.bf16 %v416_v12, %v412_v16 }
 0x132   :  { %v421_v17 = vpop.f32.mrf.mxu0 }
 0x133   :  { %v531_v18 = vpack.c.bf16 %v418_v15, %v414_v14  ;;  %v422_v28 = vadd.f32 %v421_v17, %v1614_v24 }
 0x134   :  { %v423_v20 = vpop.f32.mrf.mxu0 }
 0x135   :  { %759 = vmatprep.mubr.bf16.mxu1 %v531_v18  ;;  %v424_v26 = vadd.f32 %v423_v20, %v1612_v23 }
 0x136   :  { %v425_v21 = vpop.f32.mrf.mxu0  ;;  %760 = vmatmul.mubr.bf16.gmra.mxu1 %v530_v19 }
 0x137   :  { %v426_v22 = vadd.f32 %v425_v21, %v1614_v24 }
 0x138   :  { %v427_v25 = vpop.f32.mrf.mxu0 }
 0x139   :  { %v428_v27 = vadd.f32 %v427_v25, %v1612_v23  ;;  %v532_v31 = vpack.c.bf16 %v426_v22, %v422_v28 }
 0x13a   :  { %v431_v29 = vpop.f32.mrf.mxu0 }
 0x13b   :  { %v533_v30 = vpack.c.bf16 %v428_v27, %v424_v26  ;;  %v432_v38 = vadd.f32 %v431_v29, %v1614_v24 }
 0x13c   :  { %v433_v32 = vpop.f32.mrf.mxu0 }
 0x13d   :  { %767 = vmatprep.mubr.bf16.mxu1 %v533_v30  ;;  %v434_v36 = vadd.f32 %v433_v32, %v1612_v23 }
 0x13e   :  { %v435_v33 = vpop.f32.mrf.mxu0  ;;  %768 = vmatmul.mubr.bf16.gmra.mxu1 %v532_v31 }
 0x13f   :  { %v436_v34 = vadd.f32 %v435_v33, %v1614_v24 }
 0x140   :  { %v437_v35 = vpop.f32.mrf.mxu0 }
 0x141   :  { %v438_v37 = vadd.f32 %v437_v35, %v1612_v23  ;;  %v534_v41 = vpack.c.bf16 %v436_v34, %v432_v38 }
 0x142   :  { %v441_v39 = vpop.f32.mrf.mxu0 }
 0x143   :  { %v535_v40 = vpack.c.bf16 %v438_v37, %v434_v36  ;;  %v442_v48 = vadd.f32 %v441_v39, %v1614_v24 }
 0x144   :  { %v443_v42 = vpop.f32.mrf.mxu0 }
 0x145   :  { %775 = vmatprep.mubr.bf16.mxu1 %v535_v40  ;;  %v444_v46 = vadd.f32 %v443_v42, %v1612_v23 }
 0x146   :  { %v445_v43 = vpop.f32.mrf.mxu0  ;;  %776 = vmatmul.mubr.bf16.gmra.mxu1 %v534_v41 }
 0x147   :  { %v446_v44 = vadd.f32 %v445_v43, %v1614_v24 }
 0x148   :  { %v447_v45 = vpop.f32.mrf.mxu0 }
 0x149   :  { %v448_v47 = vadd.f32 %v447_v45, %v1612_v23  ;;  %v536_v51 = vpack.c.bf16 %v446_v44, %v442_v48 }
 0x14a   :  { %v451_v49 = vpop.f32.mrf.mxu0 }
 0x14b   :  { %v537_v50 = vpack.c.bf16 %v448_v47, %v444_v46  ;;  %v452_v58 = vadd.f32 %v451_v49, %v1614_v24 }
 0x14c   :  { %v453_v52 = vpop.f32.mrf.mxu0 }
 0x14d   :  { %783 = vmatprep.mubr.bf16.mxu1 %v537_v50  ;;  %v454_v56 = vadd.f32 %v453_v52, %v1612_v23 }
 0x14e   :  { %v455_v53 = vpop.f32.mrf.mxu0  ;;  %784 = vmatmul.mubr.bf16.gmra.mxu1 %v536_v51 }
 0x14f   :  { %v456_v54 = vadd.f32 %v455_v53, %v1614_v24 }
 0x150   :  { %v457_v55 = vpop.f32.mrf.mxu0 }
 0x151   :  { %v458_v57 = vadd.f32 %v457_v55, %v1612_v23  ;;  %v538_v61 = vpack.c.bf16 %v456_v54, %v452_v58 }
 0x152   :  { %v461_v59 = vpop.f32.mrf.mxu0 }
 0x153   :  { %v539_v60 = vpack.c.bf16 %v458_v57, %v454_v56  ;;  %v462_v4 = vadd.f32 %v461_v59, %v1614_v24 }
 0x154   :  { %v463_v62 = vpop.f32.mrf.mxu0 }
 0x155   :  { %791 = vmatprep.mubr.bf16.mxu1 %v539_v60  ;;  %v464_v2 = vadd.f32 %v463_v62, %v1612_v23  ;;  %v1683_v62 = vld [vmem:[%s1764_s4] ss:$0 sm:$0xff] }
 0x156   :  { %v465_v63 = vpop.f32.mrf.mxu0  ;;  %792 = vmatmul.mubr.bf16.gmra.mxu1 %v538_v61 }
 0x157   :  { %v466_v0 = vadd.f32 %v465_v63, %v1614_v24 }
 0x158   :  { %v467_v1 = vpop.f32.mrf.mxu0 }
 0x159   :  { %v468_v3 = vadd.f32 %v467_v1, %v1612_v23  ;;  %v540_v7 = vpack.c.bf16 %v466_v0, %v462_v4 }
 0x15a   :  { %v471_v5 = vpop.f32.mrf.mxu0 }
 0x15b   :  { %v541_v6 = vpack.c.bf16 %v468_v3, %v464_v2  ;;  %v472_v14 = vadd.f32 %v471_v5, %v1614_v24 }
 0x15c   :  { %v473_v8 = vpop.f32.mrf.mxu0 }
 0x15d   :  { %799 = vmatprep.mubr.bf16.mxu1 %v541_v6  ;;  %v474_v12 = vadd.f32 %v473_v8, %v1612_v23 }
 0x15e   :  { %v475_v9 = vpop.f32.mrf.mxu0  ;;  %800 = vmatmul.mubr.bf16.gmra.mxu1 %v540_v7 }
 0x15f   :  { %v476_v10 = vadd.f32 %v475_v9, %v1614_v24 }
 0x160   :  { %v477_v11 = vpop.f32.mrf.mxu0 }
 0x161   :  { %v478_v13 = vadd.f32 %v477_v11, %v1612_v23  ;;  %v542_v17 = vpack.c.bf16 %v476_v10, %v472_v14 }
 0x162   :  { %v481_v15 = vpop.f32.mrf.mxu0 }
 0x163   :  { %v543_v16 = vpack.c.bf16 %v478_v13, %v474_v12  ;;  %v482_v26 = vadd.f32 %v481_v15, %v1614_v24 }
 0x164   :  { %v483_v18 = vpop.f32.mrf.mxu0 }
 0x165   :  { %807 = vmatprep.mubr.bf16.mxu1 %v543_v16  ;;  %v484_v22 = vadd.f32 %v483_v18, %v1612_v23 }
 0x166   :  { %v485_v19 = vpop.f32.mrf.mxu0  ;;  %808 = vmatmul.mubr.bf16.gmra.mxu1 %v542_v17 }
 0x167   :  { %v486_v20 = vadd.f32 %v485_v19, %v1614_v24 }
 0x168   :  { %v487_v21 = vpop.f32.mrf.mxu0 }
 0x169   :  { %v488_v25 = vadd.f32 %v487_v21, %v1612_v23  ;;  %v544_v29 = vpack.c.bf16 %v486_v20, %v482_v26 }
 0x16a   :  { %v491_v27 = vpop.f32.mrf.mxu0 }
 0x16b   :  { %v545_v28 = vpack.c.bf16 %v488_v25, %v484_v22  ;;  %v492_v36 = vadd.f32 %v491_v27, %v1614_v24 }
 0x16c   :  { %v493_v30 = vpop.f32.mrf.mxu0 }
 0x16d   :  { %815 = vmatprep.mubr.bf16.mxu1 %v545_v28  ;;  %v494_v34 = vadd.f32 %v493_v30, %v1612_v23 }
 0x16e   :  { %v495_v31 = vpop.f32.mrf.mxu0  ;;  %816 = vmatmul.mubr.bf16.gmra.mxu1 %v544_v29 }
 0x16f   :  { %v496_v32 = vadd.f32 %v495_v31, %v1614_v24 }
 0x170   :  { %v497_v33 = vpop.f32.mrf.mxu0 }
 0x171   :  { %v498_v35 = vadd.f32 %v497_v33, %v1612_v23  ;;  %v546_v39 = vpack.c.bf16 %v496_v32, %v492_v36 }
 0x172   :  { %v501_v37 = vpop.f32.mrf.mxu0 }
 0x173   :  { %v547_v38 = vpack.c.bf16 %v498_v35, %v494_v34  ;;  %v502_v46 = vadd.f32 %v501_v37, %v1614_v24 }
 0x174   :  { %v503_v40 = vpop.f32.mrf.mxu0 }
 0x175   :  { %823 = vmatprep.mubr.bf16.mxu1 %v547_v38  ;;  %v504_v44 = vadd.f32 %v503_v40, %v1612_v23 }
 0x176   :  { %v505_v41 = vpop.f32.mrf.mxu0  ;;  %824 = vmatmul.mubr.bf16.gmra.mxu1 %v546_v39 }
 0x177   :  { %v506_v42 = vadd.f32 %v505_v41, %v1614_v24 }
 0x178   :  { %v507_v43 = vpop.f32.mrf.mxu0 }
 0x179   :  { %v508_v45 = vadd.f32 %v507_v43, %v1612_v23  ;;  %v548_v49 = vpack.c.bf16 %v506_v42, %v502_v46 }
 0x17a   :  { %v511_v47 = vpop.f32.mrf.mxu0 }
 0x17b   :  { %v549_v48 = vpack.c.bf16 %v508_v45, %v504_v44  ;;  %v512_v56 = vadd.f32 %v511_v47, %v1614_v24 }
 0x17c   :  { %v513_v50 = vpop.f32.mrf.mxu0 }
 0x17d   :  { %831 = vmatprep.mubr.bf16.mxu1 %v549_v48  ;;  %v514_v54 = vadd.f32 %v513_v50, %v1612_v23 }
 0x17e   :  { %v515_v51 = vpop.f32.mrf.mxu0  ;;  %832 = vmatmul.mubr.bf16.gmra.mxu1 %v548_v49 }
 0x17f   :  { %v516_v52 = vadd.f32 %v515_v51, %v1614_v24 }
 0x180   :  { %v517_v53 = vpop.f32.mrf.mxu0 }
 0x181   :  { %v518_v55 = vadd.f32 %v517_v53, %v1612_v23  ;;  %v550_v58 = vpack.c.bf16 %v516_v52, %v512_v56 }
 0x183   :  { %v551_v57 = vpack.c.bf16 %v518_v55, %v514_v54 }
 0x185   :  { %839 = vmatprep.mubr.bf16.mxu1 %v551_v57 }
 0x186   :  { %840 = vmatmul.mubr.bf16.gmra.mxu1 %v550_v58 }
 0x1ce   :  { %v1052_v59 = vpop.f32.mrf.mxu1 }
 0x1d0   :  { %v1053_v60 = vpop.f32.mrf.mxu1 }
 0x1d1   :  { %v1054_v61 = vadd.f32 %v1053_v60, %v1052_v59 }
 0x1d2   :  { %v1055_v63 = vpop.f32.mrf.mxu1 }
 0x1d3   :  { %v722_v1 = vadd.f32 %v1054_v61, %v1683_v62 }
 0x1d4   :  { %v1056_v0 = vpop.f32.mrf.mxu1 }
 0x1d5   :  { %v1057_v2 = vadd.f32 %v1056_v0, %v1055_v63  ;;  %v848_v4 = vmax.f32 %v722_v1, 0.0 }
 0x1d6   :  { %v1058_v23 = vpop.f32.mrf.mxu1 }
 0x1d7   :  { %v725_v24 = vadd.f32 %v1057_v2, %v1683_v62 }
 0x1d8   :  { %v1059_v3 = vpop.f32.mrf.mxu1 }
 0x1d9   :  { %v849_v5 = vmax.f32 %v725_v24, 0.0  ;;  %v1060_v6 = vadd.f32 %v1059_v3, %v1058_v23 }
 0x1da   :  { %v1061_v7 = vpop.f32.mrf.mxu1 }
 0x1db   :  { %v1687_v8 = vpack.c.bf16 %v849_v5, %v848_v4  ;;  %v730_v10 = vadd.f32 %v1060_v6, %v1683_v62 }
 0x1dc   :  { %v1062_v9 = vpop.f32.mrf.mxu1 }
 0x1dd   :  { %v1063_v11 = vadd.f32 %v1062_v9, %v1061_v7  ;;  %v850_v15 = vmax.f32 %v730_v10, 0.0 }
 0x1de   :  { %v1064_v12 = vpop.f32.mrf.mxu1 }
 0x1df   :  { %v733_v13 = vadd.f32 %v1063_v11, %v1683_v62 }
 0x1e0   :  { %v1065_v14 = vpop.f32.mrf.mxu1 }
 0x1e1   :  { %v851_v16 = vmax.f32 %v733_v13, 0.0  ;;  %v1066_v17 = vadd.f32 %v1065_v14, %v1064_v12 }
 0x1e2   :  { %v1067_v18 = vpop.f32.mrf.mxu1 }
 0x1e3   :  { %v1691_v19 = vpack.c.bf16 %v851_v16, %v850_v15  ;;  %v738_v21 = vadd.f32 %v1066_v17, %v1683_v62  ;;  %v1717_v17 = vld [vmem:[%s1765_s5] sm:$0xf] }
 0x1e4   :  { %v1068_v20 = vpop.f32.mrf.mxu1  ;;  %1164 = vmatprep.mubr.bf16.mxu1 %v1717_v17 }
 0x1e5   :  { %v1069_v22 = vadd.f32 %v1068_v20, %v1067_v18  ;;  %v852_v28 = vmax.f32 %v738_v21, 0.0 }
 0x1e6   :  { %v1070_v25 = vpop.f32.mrf.mxu1 }
 0x1e7   :  { %v741_v26 = vadd.f32 %v1069_v22, %v1683_v62 }
 0x1e8   :  { %v1071_v27 = vpop.f32.mrf.mxu1 }
 0x1e9   :  { %v853_v29 = vmax.f32 %v741_v26, 0.0  ;;  %v1072_v30 = vadd.f32 %v1071_v27, %v1070_v25 }
 0x1ea   :  { %v1073_v31 = vpop.f32.mrf.mxu1 }
 0x1eb   :  { %v1695_v32 = vpack.c.bf16 %v853_v29, %v852_v28  ;;  %v746_v34 = vadd.f32 %v1072_v30, %v1683_v62 }
 0x1ec   :  { %v1074_v33 = vpop.f32.mrf.mxu1 }
 0x1ed   :  { %v1075_v35 = vadd.f32 %v1074_v33, %v1073_v31  ;;  %v854_v39 = vmax.f32 %v746_v34, 0.0  ;;  %v897_v31 = vld [vmem:[%s1766_s6] sm:$0xff]  ;;  %v1232_v34 = vmov 0  }
 0x1ee   :  { %v1076_v36 = vpop.f32.mrf.mxu1  ;;  %1167 = vset.pattern.permute.xlu0 %v1232_v34 }
 0x1ef   :  { %v749_v37 = vadd.f32 %v1075_v35, %v1683_v62  ;;  %900 = vperm.xlu0 %1167, %v897_v31  }
 0x1f0   :  { %v1077_v38 = vpop.f32.mrf.mxu1 }
 0x1f1   :  { %v855_v40 = vmax.f32 %v749_v37, 0.0  ;;  %v1078_v41 = vadd.f32 %v1077_v38, %v1076_v36 }
 0x1f2   :  { %v1079_v42 = vpop.f32.mrf.mxu1 }
 0x1f3   :  { %v1699_v43 = vpack.c.bf16 %v855_v40, %v854_v39  ;;  %v754_v45 = vadd.f32 %v1078_v41, %v1683_v62 }
 0x1f4   :  { %v1080_v44 = vpop.f32.mrf.mxu1 }
 0x1f5   :  { %v1081_v46 = vadd.f32 %v1080_v44, %v1079_v42  ;;  %v856_v50 = vmax.f32 %v754_v45, 0.0 }
 0x1f6   :  { %v1082_v47 = vpop.f32.mrf.mxu1 }
 0x1f7   :  { %v757_v48 = vadd.f32 %v1081_v46, %v1683_v62 }
 0x1f8   :  { %v1083_v49 = vpop.f32.mrf.mxu1 }
 0x1f9   :  { %v857_v51 = vmax.f32 %v757_v48, 0.0  ;;  %v1084_v52 = vadd.f32 %v1083_v49, %v1082_v47 }
 0x1fa   :  { %v1085_v53 = vpop.f32.mrf.mxu1 }
 0x1fb   :  { %v1703_v54 = vpack.c.bf16 %v857_v51, %v856_v50  ;;  %v762_v56 = vadd.f32 %v1084_v52, %v1683_v62 }
 0x1fc   :  { %v1086_v55 = vpop.f32.mrf.mxu1 }
 0x1fd   :  { %v1087_v57 = vadd.f32 %v1086_v55, %v1085_v53  ;;  %v858_v61 = vmax.f32 %v762_v56, 0.0 }
 0x1fe   :  { %v1088_v58 = vpop.f32.mrf.mxu1 }
 0x1ff   :  { %v765_v59 = vadd.f32 %v1087_v57, %v1683_v62 }
 0x200   :  { %v1089_v60 = vpop.f32.mrf.mxu1 }
 0x201   :  { %v859_v63 = vmax.f32 %v765_v59, 0.0  ;;  %v1090_v0 = vadd.f32 %v1089_v60, %v1088_v58 }
 0x202   :  { %v1091_v1 = vpop.f32.mrf.mxu1 }
 0x203   :  { %v1707_v2 = vpack.c.bf16 %v859_v63, %v858_v61  ;;  %v770_v24 = vadd.f32 %v1090_v0, %v1683_v62 }
 0x204   :  { %v1092_v23 = vpop.f32.mrf.mxu1 }
 0x205   :  { %v1093_v3 = vadd.f32 %v1092_v23, %v1091_v1  ;;  %v860_v7 = vmax.f32 %v770_v24, 0.0 }
 0x206   :  { %v1094_v4 = vpop.f32.mrf.mxu1 }
 0x207   :  { %v773_v5 = vadd.f32 %v1093_v3, %v1683_v62 }
 0x208   :  { %v1095_v6 = vpop.f32.mrf.mxu1 }
 0x209   :  { %v861_v9 = vmax.f32 %v773_v5, 0.0  ;;  %v1096_v10 = vadd.f32 %v1095_v6, %v1094_v4 }
 0x20a   :  { %v1097_v11 = vpop.f32.mrf.mxu1 }
 0x20b   :  { %v1711_v12 = vpack.c.bf16 %v861_v9, %v860_v7  ;;  %v778_v14 = vadd.f32 %v1096_v10, %v1683_v62 }
 0x20c   :  { %v1098_v13 = vpop.f32.mrf.mxu1 }
 0x20d   :  { %v1099_v15 = vadd.f32 %v1098_v13, %v1097_v11  ;;  %v862_v21 = vmax.f32 %v778_v14, 0.0 }
 0x20e   :  { %v1100_v16 = vpop.f32.mrf.mxu1 }
 0x20f   :  { %v781_v18 = vadd.f32 %v1099_v15, %v1683_v62 }
 0x210   :  { %v1101_v20 = vpop.f32.mrf.mxu1 }
 0x211   :  { %v863_v22 = vmax.f32 %v781_v18, 0.0  ;;  %v1102_v25 = vadd.f32 %v1101_v20, %v1100_v16 }
 0x212   :  { %v1103_v26 = vpop.f32.mrf.mxu1 }
 0x213   :  { %v1721_v27 = vpack.c.bf16 %v863_v22, %v862_v21  ;;  %v786_v29 = vadd.f32 %v1102_v25, %v1683_v62 }
 0x214   :  { %v1104_v28 = vpop.f32.mrf.mxu1 }
 0x215   :  { %v1105_v30 = vadd.f32 %v1104_v28, %v1103_v26  ;;  %v864_v37 = vmax.f32 %v786_v29, 0.0 }
 0x216   :  { %v1106_v33 = vpop.f32.mrf.mxu1 }
 0x217   :  { %v789_v35 = vadd.f32 %v1105_v30, %v1683_v62 }
 0x218   :  { %v1107_v36 = vpop.f32.mrf.mxu1 }
 0x219   :  { %v865_v38 = vmax.f32 %v789_v35, 0.0  ;;  %v1108_v39 = vadd.f32 %v1107_v36, %v1106_v33 }
 0x21a   :  { %v1109_v40 = vpop.f32.mrf.mxu1 }
 0x21b   :  { %v1728_v41 = vpack.c.bf16 %v865_v38, %v864_v37  ;;  %v794_v44 = vadd.f32 %v1108_v39, %v1683_v62 }
 0x21c   :  { %v1110_v42 = vpop.f32.mrf.mxu1 }
 0x21d   :  { %v1111_v45 = vadd.f32 %v1110_v42, %v1109_v40  ;;  %v866_v49 = vmax.f32 %v794_v44, 0.0 }
 0x21e   :  { %v1112_v46 = vpop.f32.mrf.mxu1 }
 0x21f   :  { %v797_v47 = vadd.f32 %v1111_v45, %v1683_v62 }
 0x220   :  { %v1113_v48 = vpop.f32.mrf.mxu1 }
 0x221   :  { %v867_v50 = vmax.f32 %v797_v47, 0.0  ;;  %v1114_v51 = vadd.f32 %v1113_v48, %v1112_v46 }
 0x222   :  { %v1115_v52 = vpop.f32.mrf.mxu1 }
 0x223   :  { %v1732_v53 = vpack.c.bf16 %v867_v50, %v866_v49  ;;  %v802_v56 = vadd.f32 %v1114_v51, %v1683_v62 }
 0x224   :  { %v1116_v55 = vpop.f32.mrf.mxu1 }
 0x225   :  { %v1117_v57 = vadd.f32 %v1116_v55, %v1115_v52  ;;  %v868_v61 = vmax.f32 %v802_v56, 0.0 }
 0x226   :  { %v1118_v58 = vpop.f32.mrf.mxu1 }
 0x227   :  { %v805_v59 = vadd.f32 %v1117_v57, %v1683_v62 }
 0x228   :  { %v1119_v60 = vpop.f32.mrf.mxu1 }
 0x229   :  { %v869_v63 = vmax.f32 %v805_v59, 0.0  ;;  %v1120_v57 = vadd.f32 %v1119_v60, %v1118_v58 }
 0x22a   :  { %v1121_v0 = vpop.f32.mrf.mxu1 }
 0x22b   :  { %v890_v1 = vpack.c.bf16 %v869_v63, %v868_v61  ;;  %v810_v63 = vadd.f32 %v1120_v57, %v1683_v62 }
 0x22c   :  { %v1122_v23 = vpop.f32.mrf.mxu1 }
 0x22d   :  { %v1123_v55 = vadd.f32 %v1122_v23, %v1121_v0 }
 0x22e   :  { %v1124_v24 = vpop.f32.mrf.mxu1 }
 0x230   :  { %v1125_v3 = vpop.f32.mrf.mxu1 }
 0x231   :  { %v1126_v48 = vadd.f32 %v1125_v3, %v1124_v24  ;;  %v870_v3 = vmax.f32 %v810_v63, 0.0 }
 0x232   :  { %v1127_v4 = vpop.f32.mrf.mxu1 }
 0x233   :  { %v818_v52 = vadd.f32 %v1126_v48, %v1683_v62 }
 0x234   :  { %v1128_v5 = vpop.f32.mrf.mxu1 }
 0x235   :  { %v1129_v46 = vadd.f32 %v1128_v5, %v1127_v4  ;;  %v872_v59 = vmax.f32 %v818_v52, 0.0 }
 0x236   :  { %v1130_v6 = vpop.f32.mrf.mxu1 }
 0x237   :  { %v821_v50 = vadd.f32 %v1129_v46, %v1683_v62 }
 0x238   :  { %v1131_v7 = vpop.f32.mrf.mxu1 }
 0x239   :  { %v1132_v38 = vadd.f32 %v1131_v7, %v1130_v6  ;;  %v873_v56 = vmax.f32 %v821_v50, 0.0 }
 0x23a   :  { %v1133_v9 = vpop.f32.mrf.mxu1 }
 0x23b   :  { %v826_v45 = vadd.f32 %v1132_v38, %v1683_v62  ;;  %v892_v61 = vpack.c.bf16 %v873_v56, %v872_v59 }
 0x23c   :  { %v1134_v10 = vpop.f32.mrf.mxu1 }
 0x23d   :  { %v1135_v34 = vadd.f32 %v1134_v10, %v1133_v9  ;;  %v874_v49 = vmax.f32 %v826_v45, 0.0 }
 0x23e   :  { %v1136_v11 = vpop.f32.mrf.mxu1 }
 0x23f   :  { %v829_v42 = vadd.f32 %v1135_v34, %v1683_v62 }
 0x240   :  { %v1137_v13 = vpop.f32.mrf.mxu1 }
 0x241   :  { %v1138_v25 = vadd.f32 %v1137_v13, %v1136_v11  ;;  %v875_v47 = vmax.f32 %v829_v42, 0.0 }
 0x242   :  { %v1139_v14 = vpop.f32.mrf.mxu1 }
 0x243   :  { %v834_v31 = vadd.f32 %v1138_v25, %v1683_v62  ;;  %v893_v51 = vpack.c.bf16 %v875_v47, %v874_v49 }
 0x244   :  { %v1140_v15 = vpop.f32.mrf.mxu1 }
 0x245   :  { %v1141_v20 = vadd.f32 %v1140_v15, %v1139_v14  ;;  %v876_v39 = vmax.f32 %v834_v31, 0.0 }
 0x246   :  { %v1142_v16 = vpop.f32.mrf.mxu1 }
 0x247   :  { %v837_v28 = vadd.f32 %v1141_v20, %v1683_v62 }
 0x248   :  { %v1143_v18 = vpop.f32.mrf.mxu1 }
 0x249   :  { %v1144_v21 = vadd.f32 %v1143_v18, %v1142_v16  ;;  %v877_v35 = vmax.f32 %v837_v28, 0.0 }
 0x24a   :  { %v1145_v22 = vpop.f32.mrf.mxu1 }
 0x24b   :  { %v842_v29 = vadd.f32 %v1144_v21, %v1683_v62  ;;  %v894_v44 = vpack.c.bf16 %v877_v35, %v876_v39 }
 0x24c   :  { %v1146_v26 = vpop.f32.mrf.mxu1 }
 0x24d   :  { %v1147_v30 = vadd.f32 %v1146_v26, %v1145_v22  ;;  %v878_v36 = vmax.f32 %v842_v29, 0.0 }
 0x24f   :  { %v845_v33 = vadd.f32 %v1147_v30, %v1683_v62 }
 0x251   :  { %v879_v37 = vmax.f32 %v845_v33, 0.0 }
 0x253   :  { %v895_v40 = vpack.c.bf16 %v879_v37, %v878_v36 }
 0x255   :  { %1148 = vmatprep.subr.bf16.mxu1 %v895_v40 }
 0x256   :  { %1149 = vmatpush3.bf16.xpose.msra.mxu1 %v1721_v27  ;;  %v813_v27 = vadd.f32 %v1123_v55, %v1683_v62 }
 0x257   :  { %1150 = vmatprep.subr.bf16.mxu1 %v894_v44 }
 0x258   :  { %v871_v24 = vmax.f32 %v813_v27, 0.0 }
 0x25a   :  { %v891_v4 = vpack.c.bf16 %v871_v24, %v870_v3 }
 0x25e   :  { %1151 = vmatpush3.bf16.xpose.msra.mxu1 %v1711_v12 }
 0x25f   :  { %1152 = vmatprep.subr.bf16.mxu1 %v893_v51 }
 0x266   :  { %1153 = vmatpush3.bf16.xpose.msra.mxu1 %v1707_v2 }
 0x267   :  { %1154 = vmatprep.subr.bf16.mxu1 %v892_v61 }
 0x26a   :  { %v901_v62 = vpop.permute.xlu0 %900 }
 0x26e   :  { %1155 = vmatpush3.bf16.xpose.msra.mxu1 %v1703_v54 }
 0x26f   :  { %1156 = vmatprep.subr.bf16.mxu1 %v891_v4 }
 0x276   :  { %1157 = vmatpush3.bf16.xpose.msra.mxu1 %v1699_v43 }
 0x277   :  { %1158 = vmatprep.subr.bf16.mxu1 %v890_v1 }
 0x27e   :  { %1159 = vmatpush3.bf16.xpose.msra.mxu1 %v1695_v32 }
 0x27f   :  { %1160 = vmatprep.subr.bf16.mxu1 %v1732_v53 }
 0x286   :  { %1161 = vmatpush3.bf16.xpose.msra.mxu1 %v1691_v19 }
 0x287   :  { %1162 = vmatprep.subr.bf16.mxu1 %v1728_v41 }
 0x28e   :  { %1163 = vmatpush3.bf16.xpose.msra.mxu1 %v1687_v8 }
 0x295   :  { %1165 = vmatmul.mubr.bf16.vlgmr.msra.gmra.mxu1 %v1717_v17 }
 0x355   :  { %v937_v2 = vpop.f32.mrf.mxu1 }
 0x356   :  { %v938_v12 = vadd.f32 %v937_v2, %v901_v62 }
 0x357   :  { %v939_v54 = vpop.f32.mrf.mxu1 }
 0x358   :  { %977 = vst [vmem:[%s1767_s7] sm:$0xff] %v938_v12 }
 0x359   :  { %v941_v43 = vpop.f32.mrf.mxu1 }
 0x35b   :  { %v942_v32 = vpop.f32.mrf.mxu1 }

</bundles_post_ra>
